<compile_context>
chip_gen: v6e
topology: v6e:2x2x1
jax: 0.10.0
libtpu: 0.0.40
codegen_flags: <defaults>
</compile_context>

<pallas_src>
import functools

import jax
import jax.numpy as jnp
import numpy as np
from jax.experimental import pallas as pl
from jax.experimental.pallas import tpu as pltpu

_EPS = 1e-8
_SUB = 8  # sublanes per tile


def _loss_bce_kernel(wtab_ref, yp_ref, y_ref, out_ref, acc_ref,
                     *, batch, cols, lane_tile):
    k = pl.program_id(0)

    @pl.when(k == 0)
    def _():
        acc_ref[0] = jnp.float32(0.0)  # S1 = sum_i w_i * log(yp_i + eps)
        acc_ref[1] = jnp.float32(0.0)  # S2 = sum_i log(1 - yp_i + eps)
        acc_ref[2] = jnp.float32(0.0)  # Sy = sum_j y_j

    yp = yp_ref[...]   # (8, lane_tile) f32 predictions (zero padded tail)
    yv = y_ref[...]    # (8, lane_tile) f32 targets     (zero padded tail)
    w0 = wtab_ref[0]   # Y_weights[0]
    w1 = wtab_ref[1]   # Y_weights[1]

    # Validity mask for the zero padding: element (r, c) of tile k sits at flat
    # index r*cols + k*lane_tile + c of the original length-B vector.
    row = jax.lax.broadcasted_iota(jnp.int32, (_SUB, lane_tile), 0)
    col = jax.lax.broadcasted_iota(jnp.int32, (_SUB, lane_tile), 1)
    flat_idx = row * cols + (k * lane_tile + col)
    valid = flat_idx < batch

    # w = Y_weights[(y > 0.5)]  (class-weight gather done as a select on the VPU)
    w = jnp.where(yv > 0.5, w1, w0)
    log_p = jnp.log(yp + _EPS)          # EUP
    log_1mp = jnp.log(1.0 - yp + _EPS)  # EUP

    acc_ref[0] += jnp.sum(jnp.where(valid, w * log_p, 0.0))
    acc_ref[1] += jnp.sum(jnp.where(valid, log_1mp, 0.0))
    acc_ref[2] += jnp.sum(yv)           # padding is 0.0, contributes nothing

    @pl.when(k == pl.num_programs(0) - 1)
    def _():
        s1 = acc_ref[0]
        s2 = acc_ref[1]
        sy = acc_ref[2]
        b_f = jnp.float32(batch)
        # sum over the full (B, B) broadcast matrix, via its rank-1 structure
        total = s1 * sy + s2 * (b_f - sy)
        out_ref[0, 0] = -total * (1.0 / float(batch * batch))


def loss_bce(y_prim, y, y_weights, *, lane_tile=1024):
    """y_prim: (B, 1) (or (B,)) f32 sigmoid outputs, y: (B,) f32 binary targets,
    y_weights: (2,) f32 class-weight table (dataset_full.Y_weights)."""
    B = int(np.prod(y.shape))
    yp = jnp.ravel(y_prim).astype(jnp.float32)
    yv = jnp.ravel(y).astype(jnp.float32)

    # Lane-dense layout: pad to a multiple of (8 sublanes x lane_tile lanes) and
    # reshape to (8, cols).  Tiny batches collapse to a single (8, 128) tile.
    lane_tile = max(128, min(int(lane_tile), pl.next_power_of_2(pl.cdiv(B, _SUB))))
    blk = _SUB * lane_tile
    num_tiles = pl.cdiv(B, blk)
    padded = num_tiles * blk
    yp = jnp.pad(yp, (0, padded - B))   # zero pad: logs stay finite, masked out in-kernel
    yv = jnp.pad(yv, (0, padded - B))   # zero pad: does not change sum(y)
    cols = padded // _SUB
    yp2 = yp.reshape(_SUB, cols)
    y2 = yv.reshape(_SUB, cols)

    kernel = functools.partial(_loss_bce_kernel,
                               batch=B, cols=cols, lane_tile=lane_tile)

    out = pl.pallas_call(
        kernel,
        out_shape=jax.ShapeDtypeStruct((1, 1), jnp.float32),
        grid=(num_tiles,),
        in_specs=[
            pl.BlockSpec(memory_space=pltpu.SMEM),              # Y_weights (2,) table
            pl.BlockSpec((_SUB, lane_tile), lambda k: (0, k)),   # y_prim tiles (VMEM)
            pl.BlockSpec((_SUB, lane_tile), lambda k: (0, k)),   # y tiles (VMEM)
        ],
        out_specs=pl.BlockSpec(memory_space=pltpu.SMEM),
        scratch_shapes=[pltpu.SMEM((3,), jnp.float32)],          # S1, S2, Sy accumulators
        compiler_params=pltpu.CompilerParams(
            dimension_semantics=("arbitrary",)),
    )(y_weights.astype(jnp.float32), yp2, y2)
    return out[0, 0]


def _reference_loss(y_prim_np, y_np, y_weights_np):
    # Exact PyTorch forward semantics (including the (B, B) broadcast).
    eps = 1e-8
    y_idx = (y_np > 0.5).astype(np.int32)
    w = y_weights_np[y_idx][:, None]                     # unsqueeze(-1) -> (B, 1)
    return -np.mean(w * y_np * np.log(y_prim_np + eps)
                    + (1.0 - y_np) * np.log(1.0 - y_prim_np + eps))


if __name__ == "__main__":
    key = jax.random.PRNGKey(0)
    k_small, k_large_p, k_large_y = jax.random.split(key, 3)

    # --- small test: mirrors a training-loop batch of ai/6-nodarbiba/6-4.py ---
    B = 8
    y = jnp.array([0, 1, 1, 0, 1, 0, 0, 1], dtype=jnp.float32)
    y_prim = jax.random.uniform(k_small, (B, 1), dtype=jnp.float32,
                                minval=0.05, maxval=0.95)
    y_np = np.asarray(y)
    counts = np.array([(y_np <= 0.5).sum(), (y_np > 0.5).sum()], dtype=np.float32)
    y_weights = jnp.asarray(0.8 / counts * counts.sum(), dtype=jnp.float32)

    loss = jax.block_until_ready(loss_bce(y_prim, y, y_weights))
    ref = _reference_loss(np.asarray(y_prim), y_np, np.asarray(y_weights))
    assert np.allclose(np.asarray(loss), ref, rtol=1e-5, atol=1e-6), (loss, ref)

    # --- larger test: exercises the multi-tile gridded reduction + padding mask ---
    B2 = 2500
    y2 = jax.random.bernoulli(k_large_y, 0.4, (B2,)).astype(jnp.float32)
    y_prim2 = jax.random.uniform(k_large_p, (B2, 1), dtype=jnp.float32,
                                 minval=0.05, maxval=0.95)
    y2_np = np.asarray(y2)
    counts2 = np.array([(y2_np <= 0.5).sum(), (y2_np > 0.5).sum()], dtype=np.float32)
    y_weights2 = jnp.asarray(0.8 / counts2 * counts2.sum(), dtype=jnp.float32)

    loss2 = jax.block_until_ready(loss_bce(y_prim2, y2, y_weights2, lane_tile=128))
    ref2 = _reference_loss(np.asarray(y_prim2), y2_np, np.asarray(y_weights2))
    assert np.allclose(np.asarray(loss2), ref2, rtol=1e-4, atol=1e-6), (loss2, ref2)

    print("KERNEL_OK")
</pallas_src>

<mosaic_0001>
module attributes {stable_mosaic.version = 11 : i64} {
  func.func @_loss_bce_kernel(%arg0: i32, %arg1: memref<2xf32, #tpu.memory_space<smem>>, %arg2: memref<8x128xf32, #tpu.memory_space<vmem>>, %arg3: memref<8x128xf32, #tpu.memory_space<vmem>>, %arg4: memref<1x1xf32, #tpu.memory_space<smem>>, %arg5: memref<3xf32, #tpu.memory_space<smem>>) attributes {dimension_semantics = [#tpu.dimension_semantics<arbitrary>], iteration_bounds = array<i64: 1>, scalar_prefetch = 0 : i64, scratch_operands = 1 : i64, tpu.core_type = #tpu.core_type<tc>, window_params = [{transform_indices = @transform_0, window_bounds = array<i64: 2>}, {transform_indices = @transform_1, window_bounds = array<i64: 8, 128>}, {transform_indices = @transform_2, window_bounds = array<i64: 8, 128>}, {transform_indices = @transform_3, window_bounds = array<i64: 1, 1>}]} {
    %c0_i32 = arith.constant 0 : i32
    %0 = arith.cmpi eq, %arg0, %c0_i32 : i32
    %1 = arith.extui %0 : i1 to i32
    %c0_i32_0 = arith.constant 0 : i32
    %2 = arith.cmpi ne, %1, %c0_i32_0 : i32
    scf.if %2 {
      %cst_21 = arith.constant 0.000000e+00 : f32
      %c0_22 = arith.constant 0 : index
      %59 = memref.load %arg5[%c0_22] : memref<3xf32, #tpu.memory_space<smem>>
      memref.store %cst_21, %arg5[%c0_22] : memref<3xf32, #tpu.memory_space<smem>>
      %cst_23 = arith.constant 0.000000e+00 : f32
      %c1_24 = arith.constant 1 : index
      %60 = memref.load %arg5[%c1_24] : memref<3xf32, #tpu.memory_space<smem>>
      memref.store %cst_23, %arg5[%c1_24] : memref<3xf32, #tpu.memory_space<smem>>
      %cst_25 = arith.constant 0.000000e+00 : f32
      %c2_26 = arith.constant 2 : index
      %61 = memref.load %arg5[%c2_26] : memref<3xf32, #tpu.memory_space<smem>>
      memref.store %cst_25, %arg5[%c2_26] : memref<3xf32, #tpu.memory_space<smem>>
    } else {
    }
    %c0 = arith.constant 0 : index
    %c0_1 = arith.constant 0 : index
    %3 = vector.load %arg2[%c0, %c0_1] : memref<8x128xf32, #tpu.memory_space<vmem>>, vector<8x128xf32>
    %c0_2 = arith.constant 0 : index
    %c0_3 = arith.constant 0 : index
    %4 = vector.load %arg3[%c0_2, %c0_3] : memref<8x128xf32, #tpu.memory_space<vmem>>, vector<8x128xf32>
    %c0_4 = arith.constant 0 : index
    %5 = memref.load %arg1[%c0_4] : memref<2xf32, #tpu.memory_space<smem>>
    %c1 = arith.constant 1 : index
    %6 = memref.load %arg1[%c1] : memref<2xf32, #tpu.memory_space<smem>>
    %7 = tpu.iota {dimensions = array<i32: 0>} : vector<8x128xi32>
    %8 = tpu.iota {dimensions = array<i32: 1>} : vector<8x128xi32>
    %c128_i32 = arith.constant 128 : i32
    %9 = vector.broadcast %c128_i32 : i32 to vector<8x128xi32>
    %10 = arith.muli %7, %9 : vector<8x128xi32>
    %c128_i32_5 = arith.constant 128 : i32
    %11 = arith.muli %arg0, %c128_i32_5 : i32
    %12 = vector.broadcast %11 : i32 to vector<8x128xi32>
    %13 = arith.addi %12, %8 : vector<8x128xi32>
    %14 = arith.addi %10, %13 : vector<8x128xi32>
    %c8_i32 = arith.constant 8 : i32
    %15 = vector.broadcast %c8_i32 : i32 to vector<8x128xi32>
    %16 = arith.cmpi slt, %14, %15 : vector<8x128xi32>
    %cst = arith.constant 5.000000e-01 : f32
    %17 = vector.broadcast %cst : f32 to vector<8x128xf32>
    %18 = arith.cmpf ogt, %4, %17 : vector<8x128xf32>
    %19 = vector.broadcast %6 : f32 to vector<8x128xf32>
    %20 = vector.broadcast %5 : f32 to vector<8x128xf32>
    %21 = arith.select %18, %19, %20 : vector<8x128xi1>, vector<8x128xf32>
    %cst_6 = arith.constant 9.99999993E-9 : f32
    %22 = vector.broadcast %cst_6 : f32 to vector<8x128xf32>
    %23 = arith.addf %3, %22 : vector<8x128xf32>
    %24 = math.log %23 : vector<8x128xf32>
    %cst_7 = arith.constant 1.000000e+00 : f32
    %25 = vector.broadcast %cst_7 : f32 to vector<8x128xf32>
    %26 = arith.subf %25, %3 : vector<8x128xf32>
    %cst_8 = arith.constant 9.99999993E-9 : f32
    %27 = vector.broadcast %cst_8 : f32 to vector<8x128xf32>
    %28 = arith.addf %26, %27 : vector<8x128xf32>
    %29 = math.log %28 : vector<8x128xf32>
    %c0_9 = arith.constant 0 : index
    %30 = memref.load %arg5[%c0_9] : memref<3xf32, #tpu.memory_space<smem>>
    %31 = arith.mulf %21, %24 : vector<8x128xf32>
    %cst_10 = arith.constant 0.000000e+00 : f32
    %32 = vector.broadcast %cst_10 : f32 to vector<8x128xf32>
    %33 = arith.select %16, %31, %32 : vector<8x128xi1>, vector<8x128xf32>
    %34 = vector.shape_cast %33 : vector<8x128xf32> to vector<1x8x128xf32>
    %cst_11 = arith.constant dense<0.000000e+00> : vector<1xf32>
    %35 = vector.multi_reduction <add>, %34, %cst_11 [1, 2] : vector<1x8x128xf32> to vector<1xf32>
    %36 = vector.shape_cast %35 : vector<1xf32> to vector<1x1x1xf32>
    %37 = vector.extract %36[0, 0, 0] : f32 from vector<1x1x1xf32>
    %38 = arith.addf %30, %37 : f32
    %c0_12 = arith.constant 0 : index
    %39 = memref.load %arg5[%c0_12] : memref<3xf32, #tpu.memory_space<smem>>
    memref.store %38, %arg5[%c0_12] : memref<3xf32, #tpu.memory_space<smem>>
    %c1_13 = arith.constant 1 : index
    %40 = memref.load %arg5[%c1_13] : memref<3xf32, #tpu.memory_space<smem>>
    %cst_14 = arith.constant 0.000000e+00 : f32
    %41 = vector.broadcast %cst_14 : f32 to vector<8x128xf32>
    %42 = arith.select %16, %29, %41 : vector<8x128xi1>, vector<8x128xf32>
    %43 = vector.shape_cast %42 : vector<8x128xf32> to vector<1x8x128xf32>
    %cst_15 = arith.constant dense<0.000000e+00> : vector<1xf32>
    %44 = vector.multi_reduction <add>, %43, %cst_15 [1, 2] : vector<1x8x128xf32> to vector<1xf32>
    %45 = vector.shape_cast %44 : vector<1xf32> to vector<1x1x1xf32>
    %46 = vector.extract %45[0, 0, 0] : f32 from vector<1x1x1xf32>
    %47 = arith.addf %40, %46 : f32
    %c1_16 = arith.constant 1 : index
    %48 = memref.load %arg5[%c1_16] : memref<3xf32, #tpu.memory_space<smem>>
    memref.store %47, %arg5[%c1_16] : memref<3xf32, #tpu.memory_space<smem>>
    %c2 = arith.constant 2 : index
    %49 = memref.load %arg5[%c2] : memref<3xf32, #tpu.memory_space<smem>>
    %50 = vector.shape_cast %4 : vector<8x128xf32> to vector<1x8x128xf32>
    %cst_17 = arith.constant dense<0.000000e+00> : vector<1xf32>
    %51 = vector.multi_reduction <add>, %50, %cst_17 [1, 2] : vector<1x8x128xf32> to vector<1xf32>
    %52 = vector.shape_cast %51 : vector<1xf32> to vector<1x1x1xf32>
    %53 = vector.extract %52[0, 0, 0] : f32 from vector<1x1x1xf32>
    %54 = arith.addf %49, %53 : f32
    %c2_18 = arith.constant 2 : index
    %55 = memref.load %arg5[%c2_18] : memref<3xf32, #tpu.memory_space<smem>>
    memref.store %54, %arg5[%c2_18] : memref<3xf32, #tpu.memory_space<smem>>
    %c0_i32_19 = arith.constant 0 : i32
    %56 = arith.cmpi eq, %arg0, %c0_i32_19 : i32
    %57 = arith.extui %56 : i1 to i32
    %c0_i32_20 = arith.constant 0 : i32
    %58 = arith.cmpi ne, %57, %c0_i32_20 : i32
    scf.if %58 {
      %c0_21 = arith.constant 0 : index
      %59 = memref.load %arg5[%c0_21] : memref<3xf32, #tpu.memory_space<smem>>
      %c1_22 = arith.constant 1 : index
      %60 = memref.load %arg5[%c1_22] : memref<3xf32, #tpu.memory_space<smem>>
      %c2_23 = arith.constant 2 : index
      %61 = memref.load %arg5[%c2_23] : memref<3xf32, #tpu.memory_space<smem>>
      %62 = arith.mulf %59, %61 : f32
      %cst_24 = arith.constant 8.000000e+00 : f32
      %63 = arith.subf %cst_24, %61 : f32
      %64 = arith.mulf %60, %63 : f32
      %65 = arith.addf %62, %64 : f32
      %cst_25 = arith.constant 0.000000e+00 : f32
      %66 = arith.subf %cst_25, %65 : f32
      %cst_26 = arith.constant 1.562500e-02 : f32
      %67 = arith.mulf %66, %cst_26 : f32
      %c0_27 = arith.constant 0 : index
      %c0_28 = arith.constant 0 : index
      %68 = memref.load %arg4[%c0_27, %c0_28] : memref<1x1xf32, #tpu.memory_space<smem>>
      memref.store %67, %arg4[%c0_27, %c0_28] : memref<1x1xf32, #tpu.memory_space<smem>>
    } else {
    }
    return
  }
  func.func @transform_0(%arg0: i32) -> i32 {
    %c0_i32 = arith.constant 0 : i32
    %c0_i32_0 = arith.constant 0 : i32
    return %c0_i32 : i32
  }
  func.func @transform_1(%arg0: i32) -> (i32, i32) {
    %c0_i32 = arith.constant 0 : i32
    %c0_i32_0 = arith.constant 0 : i32
    return %c0_i32, %arg0 : i32, i32
  }
  func.func @transform_2(%arg0: i32) -> (i32, i32) {
    %c0_i32 = arith.constant 0 : i32
    %c0_i32_0 = arith.constant 0 : i32
    return %c0_i32, %arg0 : i32, i32
  }
  func.func @transform_3(%arg0: i32) -> (i32, i32) {
    %c0_i32 = arith.constant 0 : i32
    %c0_i32_0 = arith.constant 0 : i32
    %c0_i32_1 = arith.constant 0 : i32
    return %c0_i32, %c0_i32_0 : i32, i32
  }
}

</mosaic_0001>

<bundles_post_ra>
// kernel: tpu_custom_call.1
= control target key start
LH: loop header
LB: loop body
LE: loop exit
PB: predicated region body
PF: predicated region fallthrough
CT: control target
= control target key end

     0   :  { %8 = vsyncpa [#allocation5], 0  ;;  %s276_s0 = inlined_call_operand.hbm [shape: f32[2], index: 0, kind: input, shape index: {}]   ;;  %s277_s1 = inlined_call_operand.hbm [shape: f32[8,128], index: 1, kind: input, shape index: {}]   ;;  %s278_s2 = inlined_call_operand.hbm [shape: f32[8,128], index: 2, kind: input, shape index: {}]   ;;  %s279_s3 = inlined_call_operand.hbm [shape: f32[1,1], index: 3, kind: output, shape index: {}]  }
   0x1   :  { %9 = vsyncpa [#allocation4], 0 }
   0x2   :  { %10 = vsyncpa [#allocation9], 0 }
   0x3   :  { %11 = vsyncpa [#allocation6], 0  ;;  %s240_s12 = smov [#allocation3]   ;;  %s241_s15 = smov [#allocation7]  }
   0x4   :  { %19 = dma.hbm_to_smem %s276_s0, 16, %s240_s12, [#allocation5]  }
   0x5   :  { %s26_s16 = sshll.u32 %s241_s15, 4  ;;  %s242_s17 = smov [#allocation8]   ;;  %s27_s16 = int_to_ptr.vmem [resolvable:$true] %s26_s16 }
   0x6   :  { %s36_s18 = sshll.u32 %s242_s17, 4  ;;  %s192_s19 = scalar_lea.vmem %s27_s16, 128  ;;  %s37_s18 = int_to_ptr.vmem [resolvable:$true] %s36_s18 }
   0x7   :  { %p193_p0 = scmp.ne.s32.totalorder %s27_s16, %s192_s19  ;;  %p197_p1 = scmp.lt.s32.totalorder %s27_s16, %s27_s16 }
   0x8   :  { %p198_p2 = scmp.lt.s32.totalorder %s192_s19, %s192_s19 }
   0xa   :  { %p199_p3 = por %p198_p2, %p197_p1 }
   0xc   :  { %p200_p4 = pnand %p199_p3, %p193_p0 }
   0xe   :  { %203 = shalt.err (!%p200_p4)
}
   0xf   :  { %29 = dma.hbm_to_vmem [thread:$0]  %s277_s1, 128, %s27_s16, [#allocation4]  }
  0x10   :  { %s212_s22 = scalar_lea.vmem %s37_s18, 128  ;;  %p217_p6 = scmp.lt.s32.totalorder %s37_s18, %s37_s18 }
  0x11   :  { %p213_p5 = scmp.ne.s32.totalorder %s37_s18, %s212_s22  ;;  %p218_p7 = scmp.lt.s32.totalorder %s212_s22, %s212_s22 }
  0x13   :  { %p219_p8 = por %p218_p7, %p217_p6 }
  0x15   :  { %p220_p9 = pnand %p219_p8, %p213_p5 }
  0x17   :  { %223 = shalt.err (!%p220_p9)
}
  0x18   :  { %39 = dma.hbm_to_vmem [thread:$0]  %s278_s2, 128, %s37_s18, [#allocation9]  }
  0x19   :  { %232 = dma.done.wait [#allocation5], 16  }
  0x1a   :  { %233 = vsyncadd [#allocation5], 4294967280 }
  0x1b   :  { %234 = dma.done.wait [#allocation4], 128  }
  0x1c   :  { %235 = vsyncadd [#allocation4], 4294967168 }
  0x1d   :  { %236 = dma.done.wait [#allocation9], 128  }
  0x1e   :  { %237 = vsyncadd [#allocation9], 4294967168 }
  0x1f   :  { %49 = sfence }
  0x20   :  { %v61_v0 = vld [vmem:[#allocation8] sm:$0xff]  ;;  %v60_v1 = vld [vmem:[#allocation7] sm:$0xff]  ;;  %v64_v4 = vlaneseq  ;;  %s62_s1 = sld [smem:[#allocation3]]  ;;  %s243_s6 = smov [#allocation10]  }
  0x21   :  { %115 = vadd.xlane.f32.xlu1 %v61_v0  ;;  %v78_v2 = vadd.f32 1e-08, %v60_v1  ;;  %v81_v3 = vsub.f32 1.0, %v60_v1  ;;  %s157_s24 = sld [smem:[#allocation3 + $0x1]]  ;;  %vm74_vm0 = vcmp.gt.f32.partialorder %v61_v0, 0.5 }
  0x22   :  { %v65_v6 = vshrl.u32 %v64_v4, 7  ;;  %v67_v7 = vand.u32 127, %v64_v4 }
  0x23   :  { %172 = vlog2.f32 %v78_v2  ;;  %v82_v5 = vadd.f32 1e-08, %v81_v3 }
  0x24   :  { %v68_v8 = vmul.u32 128, %v65_v6 }
  0x25   :  { %174 = vlog2.f32 %v82_v5 }
  0x26   :  { %v76_v10 = vstv %s62_s1  ;;  %v72_v11 = vadd.s32 %v68_v8, %v67_v7 }
  0x27   :  { %v75_v9 = vstv %s157_s24 }
  0x28   :  { %v77_v13 = vsel %vm74_vm0, %v75_v9, %v76_v10  ;;  %vm73_vm1 = vcmp.lt.s32.totalorder %v72_v11, 8 }
  0x30   :  { %v173_v12 = vpop.eup %172 }
  0x31   :  { %v80_v14 = vmul.f32 0.6931472, %v173_v12 }
  0x32   :  { %v175_v15 = vpop.eup %174 }
  0x33   :  { %v86_v16 = vmul.f32 %v80_v14, %v77_v13  ;;  %v84_v17 = vmul.f32 0.6931472, %v175_v15 }
  0x35   :  { %v87_v18 = vsel %vm73_vm1, %v86_v16, 0.0  ;;  %v101_v19 = vsel %vm73_vm1, %v84_v17, 0.0 }
  0x36   :  { %88 = vadd.xlane.f32.xlu0 %v87_v18 }
  0x3a   :  { %102 = vadd.xlane.f32.xlu0 %v101_v19 }
  0xaa   :  { %v116_v20 = vpop.xlane.xlu1 %115 }
  0xab   :  { %v117_v21 = vrot.slane %v116_v20, 4 }
  0xad   :  { %v118_v22 = vadd.f32 %v117_v21, %v116_v20 }
  0xaf   :  { %v119_v26 = vrot.slane %v118_v22, 2 }
  0xb1   :  { %v120_v32 = vadd.f32 %v119_v26, %v118_v22 }
  0xb3   :  { %v121_v37 = vrot.slane %v120_v32, 1 }
  0xb5   :  { %v122_v40 = vadd.f32 %v121_v37, %v120_v32 }
  0xbf   :  { %v89_v23 = vpop.xlane.xlu0 %88 }
  0xc0   :  { %v90_v24 = vrot.slane %v89_v23, 4 }
  0xc2   :  { %v91_v25 = vadd.f32 %v90_v24, %v89_v23 }
  0xc3   :  { %v103_v27 = vpop.xlane.xlu0 %102 }
  0xc4   :  { %v92_v28 = vrot.slane %v91_v25, 2  ;;  %v104_v29 = vrot.slane %v103_v27, 4 }
  0xc6   :  { %v105_v30 = vadd.f32 %v104_v29, %v103_v27  ;;  %v93_v31 = vadd.f32 %v92_v28, %v91_v25 }
  0xc8   :  { %v106_v33 = vrot.slane %v105_v30, 2  ;;  %v94_v34 = vrot.slane %v93_v31, 1 }
  0xca   :  { %v107_v35 = vadd.f32 %v106_v33, %v105_v30  ;;  %v95_v36 = vadd.f32 %v94_v34, %v93_v31 }
  0xcc   :  { %162 = vpush %v95_v36  ;;  %v108_v38 = vrot.slane %v107_v35, 1 }
  0xce   :  { %v109_v39 = vadd.f32 %v108_v38, %v107_v35 }
  0xd0   :  { %164 = vpush %v109_v39 }
  0xd1   :  { %166 = vpush %v122_v40 }
  0xfd   :  { %s163_s2 = spop %162 }
 0x101   :  { %s165_s25 = spop %164 }
 0x102   :  { %s167_s26 = spop %166 }
 0x103   :  { %s134_s27 = ssub.f32 8.0, %s167_s26  ;;  %s133_s28 = smul.f32 %s167_s26, %s163_s2 }
 0x105   :  { %s135_s29 = smul.f32 %s165_s25, %s134_s27 }
 0x107   :  { %s136_s30 = sadd.f32 %s135_s29, %s133_s28 }
 0x109   :  { %s137_s4 = ssub.f32 0.0, %s136_s30 }
 0x10b   :  { %s138_s5 = smul.f32 0.015625, %s137_s4 }
 0x10d   :  { %140 = sst [smem:[#allocation10]] %s138_s5 }
 0x10e   :  { %148 = dma.smem_to_hbm %s243_s6, 16, %s279_s3, [#allocation6]  }
 0x10f   :  { %238 = dma.done.wait [#allocation6], 16  }
 0x110   :  { %239 = vsyncadd [#allocation6], 4294967280 }
 0x111   :  { %152 = sfence }
 0x112   :  { %153 = vsyncpa [#allocation4], 1 }
 0x113   :  { %154 = vsyncpa [#allocation9], 1 }
 0x114   :  { %155 = vsyncpa [#allocation5], 1 }
 0x115   :  { %156 = vsyncpa [#allocation6], 1 }

</bundles_post_ra>
